<compile_context>
chip_gen: v5e
topology: v5e:2x2
jax: 0.10.0
libtpu: 0.0.40
codegen_flags: <defaults>
</compile_context>

<pallas_src>
import math
import jax
import jax.numpy as jnp
from jax.experimental import pallas as pl
from jax.experimental.pallas import tpu as pltpu

LN_EPS = 1e-5
LANE = 128
SUBLANE = 8
MAX_BATCH_TILE = 512


def _round_up(x, m):
    return (x + m - 1) // m * m


# ---------------------------------------------------------------------------
# Fused kernel: all MLP blocks + folded attention/output, one batch tile.
# refs layout: x_ref, [w_0, bgb_0, ..., w_{L-1}, bgb_{L-1}], w_final, b_final, o_ref
# ---------------------------------------------------------------------------
def _make_fused_kernel(num_layers, skips, hidden_sizes, hidden_pads):
    def kernel(x_ref, *refs):
        o_ref = refs[-1]
        x = x_ref[...]
        for i in range(num_layers):
            w = refs[2 * i][...]            # (prev, h_pad), pre-transposed
            bgb = refs[2 * i + 1][...]      # (3, h_pad): bias / gamma / beta
            h_act = hidden_sizes[i]
            h_pad = hidden_pads[i]

            # Linear (MXU).  Padded weight cols + padded bias are zero, so the
            # padded feature lanes of y are exactly zero.
            y = jnp.dot(x, w, preferred_element_type=jnp.float32) + bgb[0:1, :]

            # LayerNorm over the ACTUAL feature width (biased variance, torch
            # semantics).  Padded lanes of y are 0, so they each contribute
            # mu^2 to sum((y-mu)^2); subtract that instead of masking lanes.
            inv_h = 1.0 / h_act
            mu = jnp.sum(y, axis=-1, keepdims=True) * inv_h
            d = y - mu
            ssq = jnp.sum(d * d, axis=-1, keepdims=True)
            extra = h_pad - h_act
            if extra:
                ssq = ssq - extra * (mu * mu)   # cheap (tb,1) fixup, exact
            var = ssq * inv_h
            y = d * jax.lax.rsqrt(var + LN_EPS) * bgb[1:2, :] + bgb[2:3, :]

            # tanh-GELU: transcendental goes to the EUP slot (the kernel is
            # VALU-bound); ~5e-4 max deviation from the exact-erf nn.GELU.
            # Dropout(0.1) == identity at inference.  gelu(0)=0 keeps padded
            # lanes at zero.
            y = jax.nn.gelu(y, approximate=True)

            # Residual: the input of this layer IS residuals[-1] of the spec.
            if skips[i]:
                y = y + x
            x = y

        # Attention on a length-1 sequence (+ residual + output Linear),
        # folded at prep time into a single matmul of true output width.
        wf = refs[2 * num_layers][...]          # (H_pad, output_size)
        bf = refs[2 * num_layers + 1][...]      # (1, output_size)
        o_ref[...] = jnp.dot(x, wf, preferred_element_type=jnp.float32) + bf
    return kernel


# ---------------------------------------------------------------------------
# Wrapper: BlockSpecs + cdiv grid over batch tiles (no padding, no slicing).
# ---------------------------------------------------------------------------
def make_forward(input_size, output_size, hidden_sizes):
    h_pads = [_round_up(h, LANE) for h in hidden_sizes]
    skips = [i > 0 and hidden_sizes[i - 1] == hidden_sizes[i]
             for i in range(len(hidden_sizes))]
    kernel = _make_fused_kernel(len(hidden_sizes), skips, hidden_sizes, h_pads)

    def forward(x, kp):
        B = x.shape[0]
        if B <= SUBLANE:
            tb = B                      # full-array block, single grid step
        else:
            # >=2 tiles (keeps both v7x TensorCores busy) and up to 512 rows
            # per tile to amortize the ~0.35us/step pipeline overhead.
            tb = min(MAX_BATCH_TILE, _round_up(pl.cdiv(B, 2), SUBLANE))
        grid = (pl.cdiv(B, tb),)

        weight_args = []
        # x block: last dim equals the full array dim -> (8,128) rule is met
        # with no lane padding and no host-side copy.
        in_specs = [pl.BlockSpec((tb, input_size), lambda i: (i, 0))]
        for w, bgb in kp["layers"]:
            weight_args += [w, bgb]
            in_specs += [pl.BlockSpec(w.shape, lambda i: (0, 0)),
                         pl.BlockSpec(bgb.shape, lambda i: (0, 0))]
        weight_args += [kp["w_final"], kp["b_final"]]
        in_specs += [pl.BlockSpec(kp["w_final"].shape, lambda i: (0, 0)),
                     pl.BlockSpec(kp["b_final"].shape, lambda i: (0, 0))]

        return pl.pallas_call(
            kernel,
            out_shape=jax.ShapeDtypeStruct((B, output_size), jnp.float32),
            grid=grid,
            in_specs=in_specs,
            out_specs=pl.BlockSpec((tb, output_size), lambda i: (i, 0)),
            compiler_params=pltpu.CompilerParams(
                dimension_semantics=("parallel",)),
        )(x, *weight_args)

    return forward


# ---------------------------------------------------------------------------
# Parameter prep: transpose once, pad hidden widths to lane-dense shapes, pack
# b/gamma/beta, and algebraically fold attention + residual + output Linear.
# ---------------------------------------------------------------------------
def prepare_params(params, input_size, output_size, hidden_sizes):
    h_pads = [_round_up(h, LANE) for h in hidden_sizes]

    layers = []
    prev, prev_pad = input_size, input_size   # input kept at true width
    for lp, h, h_pad in zip(params["layers"], hidden_sizes, h_pads):
        w = jnp.zeros((prev_pad, h_pad), jnp.float32).at[:prev, :h].set(lp["w"].T)
        bgb = (jnp.zeros((3, h_pad), jnp.float32)
               .at[0, :h].set(lp["b"])
               .at[1, :h].set(lp["gamma"])
               .at[2, :h].set(lp["beta"]))
        layers.append((w, bgb))
        prev, prev_pad = h, h_pad

    H = hidden_sizes[-1]
    a, o = params["attn"], params["out"]
    # softmax over a single key position == 1  =>  attn_out = (x Wv^T + bv) Wo^T + bo
    wvo = a["wv"].T @ a["wo"].T                       # (H, H)
    bvo = a["bv"] @ a["wo"].T + a["bo"]               # (H,)
    wf_t = o["w"].T                                   # (H, O)
    w_final = (jnp.eye(H, dtype=jnp.float32) + wvo) @ wf_t
    b_final = bvo @ wf_t + o["b"]

    # Output kept at its true width: avoids 8x padded output bytes and the
    # post-kernel slice.  Only the K (sublane) dim is padded to H_pad.
    w_final_p = (jnp.zeros((h_pads[-1], output_size), jnp.float32)
                 .at[:H, :].set(w_final))
    b_final_p = b_final.reshape(1, output_size).astype(jnp.float32)
    return {"layers": layers, "w_final": w_final_p, "b_final": b_final_p}


# ---------------------------------------------------------------------------
# Deterministic synthetic parameters (PyTorch weight layout: (out, in)).
# ---------------------------------------------------------------------------
def init_params(key, input_size, output_size, hidden_sizes):
    params = {"layers": []}
    prev = input_size
    k = key
    for h in hidden_sizes:
        k, k_w, k_b = jax.random.split(k, 3)
        params["layers"].append({
            "w": jax.random.normal(k_w, (h, prev), jnp.float32) / math.sqrt(prev),
            "b": 0.01 * jax.random.normal(k_b, (h,), jnp.float32),
            "gamma": jnp.ones((h,), jnp.float32),
            "beta": jnp.zeros((h,), jnp.float32),
        })
        prev = h
    H = hidden_sizes[-1]
    k, k_v, k_o, k_f = jax.random.split(k, 4)
    params["attn"] = {
        "wv": jax.random.normal(k_v, (H, H), jnp.float32) / math.sqrt(H),
        "bv": jnp.zeros((H,), jnp.float32),
        "wo": jax.random.normal(k_o, (H, H), jnp.float32) / math.sqrt(H),
        "bo": jnp.zeros((H,), jnp.float32),
    }
    params["out"] = {
        "w": jax.random.normal(k_f, (output_size, H), jnp.float32) / math.sqrt(H),
        "b": jnp.zeros((output_size,), jnp.float32),
    }
    return params


# Pure-JAX reference (mirrors the PyTorch forward in eval mode, exact-erf GELU).
def reference_forward(x, params, hidden_sizes):
    h = x
    residuals = []
    for i, lp in enumerate(params["layers"]):
        y = h @ lp["w"].T + lp["b"]
        mu = jnp.mean(y, -1, keepdims=True)
        var = jnp.mean((y - mu) ** 2, -1, keepdims=True)
        y = (y - mu) / jnp.sqrt(var + LN_EPS) * lp["gamma"] + lp["beta"]
        y = jax.nn.gelu(y, approximate=False)
        if i > 0 and hidden_sizes[i - 1] == hidden_sizes[i]:
            y = y + residuals[-1]
        residuals.append(y)
        h = y
    a, o = params["attn"], params["out"]
    v = h @ a["wv"].T + a["bv"]
    attn = v @ a["wo"].T + a["bo"]          # softmax over 1 key == 1
    return (h + attn) @ o["w"].T + o["b"]


if __name__ == "__main__":
    key = jax.random.PRNGKey(0)
    B = 4
    input_size = 32
    output_size = 16
    # small hidden sizes; repeated 48 exercises the skip-connection branch;
    # last hidden must be divisible by num_heads=4.
    hidden_sizes = [64, 48, 48, 32]

    params = init_params(key, input_size, output_size, hidden_sizes)
    kparams = prepare_params(params, input_size, output_size, hidden_sizes)
    forward = make_forward(input_size, output_size, hidden_sizes)

    x = jax.random.normal(jax.random.fold_in(key, 123), (B, input_size),
                          jnp.float32)

    out = jax.block_until_ready(forward(x, kparams))
    assert out.shape == (B, output_size), out.shape
    assert bool(jnp.all(jnp.isfinite(out)))

    ref = reference_forward(x, params, hidden_sizes)
    assert bool(jnp.allclose(out, ref, rtol=1e-2, atol=1e-2)), \
        float(jnp.max(jnp.abs(out - ref)))

    print("KERNEL_OK")
</pallas_src>

<mosaic_0001>
module attributes {stable_mosaic.version = 11 : i64} {
  func.func @kernel(%arg0: i32, %arg1: memref<4x32xf32, #tpu.memory_space<vmem>>, %arg2: memref<32x128xf32, #tpu.memory_space<vmem>>, %arg3: memref<3x128xf32, #tpu.memory_space<vmem>>, %arg4: memref<128x128xf32, #tpu.memory_space<vmem>>, %arg5: memref<3x128xf32, #tpu.memory_space<vmem>>, %arg6: memref<128x128xf32, #tpu.memory_space<vmem>>, %arg7: memref<3x128xf32, #tpu.memory_space<vmem>>, %arg8: memref<128x128xf32, #tpu.memory_space<vmem>>, %arg9: memref<3x128xf32, #tpu.memory_space<vmem>>, %arg10: memref<128x16xf32, #tpu.memory_space<vmem>>, %arg11: memref<1x16xf32, #tpu.memory_space<vmem>>, %arg12: memref<4x16xf32, #tpu.memory_space<vmem>>) attributes {dimension_semantics = [#tpu.dimension_semantics<parallel>], iteration_bounds = array<i64: 1>, scalar_prefetch = 0 : i64, scratch_operands = 0 : i64, tpu.core_type = #tpu.core_type<tc>, window_params = [{transform_indices = @transform_0, window_bounds = array<i64: 4, 32>}, {pipeline_mode = #tpu.pipeline_mode<synchronous>, transform_indices = @transform_1, window_bounds = array<i64: 32, 128>}, {pipeline_mode = #tpu.pipeline_mode<synchronous>, transform_indices = @transform_2, window_bounds = array<i64: 3, 128>}, {pipeline_mode = #tpu.pipeline_mode<synchronous>, transform_indices = @transform_3, window_bounds = array<i64: 128, 128>}, {pipeline_mode = #tpu.pipeline_mode<synchronous>, transform_indices = @transform_4, window_bounds = array<i64: 3, 128>}, {pipeline_mode = #tpu.pipeline_mode<synchronous>, transform_indices = @transform_5, window_bounds = array<i64: 128, 128>}, {pipeline_mode = #tpu.pipeline_mode<synchronous>, transform_indices = @transform_6, window_bounds = array<i64: 3, 128>}, {pipeline_mode = #tpu.pipeline_mode<synchronous>, transform_indices = @transform_7, window_bounds = array<i64: 128, 128>}, {pipeline_mode = #tpu.pipeline_mode<synchronous>, transform_indices = @transform_8, window_bounds = array<i64: 3, 128>}, {pipeline_mode = #tpu.pipeline_mode<synchronous>, transform_indices = @transform_9, window_bounds = array<i64: 128, 16>}, {pipeline_mode = #tpu.pipeline_mode<synchronous>, transform_indices = @transform_10, window_bounds = array<i64: 1, 16>}, {transform_indices = @transform_11, window_bounds = array<i64: 4, 16>}]} {
    %c0 = arith.constant 0 : index
    %c0_0 = arith.constant 0 : index
    %0 = vector.load %arg1[%c0, %c0_0] : memref<4x32xf32, #tpu.memory_space<vmem>>, vector<4x32xf32>
    %c0_1 = arith.constant 0 : index
    %c0_2 = arith.constant 0 : index
    %1 = vector.load %arg2[%c0_1, %c0_2] : memref<32x128xf32, #tpu.memory_space<vmem>>, vector<32x128xf32>
    %c0_3 = arith.constant 0 : index
    %c0_4 = arith.constant 0 : index
    %2 = vector.load %arg3[%c0_3, %c0_4] : memref<3x128xf32, #tpu.memory_space<vmem>>, vector<3x128xf32>
    %cst = arith.constant dense<0.000000e+00> : vector<4x128xf32>
    %3 = tpu.matmul %0, %1, %cst {dimension_numbers = #tpu.dot_dimension_numbers<[1], [0], [0], [1], [0, 0, 1, 1], [], []>} : vector<4x32xf32>, vector<32x128xf32>, vector<4x128xf32> -> vector<4x128xf32>
    %4 = vector.extract_strided_slice %2 {offsets = [0, 0], sizes = [1, 128], strides = [1, 1]} : vector<3x128xf32> to vector<1x128xf32>
    %5 = vector.broadcast %4 : vector<1x128xf32> to vector<4x128xf32>
    %6 = arith.addf %3, %5 : vector<4x128xf32>
    %cst_5 = arith.constant dense<0.000000e+00> : vector<4xf32>
    %7 = vector.multi_reduction <add>, %6, %cst_5 [1] : vector<4x128xf32> to vector<4xf32>
    %8 = vector.shape_cast %7 : vector<4xf32> to vector<4x1xf32>
    %cst_6 = arith.constant 1.562500e-02 : f32
    %9 = vector.broadcast %cst_6 : f32 to vector<4x1xf32>
    %10 = arith.mulf %8, %9 : vector<4x1xf32>
    %11 = vector.broadcast %10 : vector<4x1xf32> to vector<4x128xf32>
    %12 = arith.subf %6, %11 : vector<4x128xf32>
    %13 = arith.mulf %12, %12 : vector<4x128xf32>
    %cst_7 = arith.constant dense<0.000000e+00> : vector<4xf32>
    %14 = vector.multi_reduction <add>, %13, %cst_7 [1] : vector<4x128xf32> to vector<4xf32>
    %15 = vector.shape_cast %14 : vector<4xf32> to vector<4x1xf32>
    %16 = arith.mulf %10, %10 : vector<4x1xf32>
    %cst_8 = arith.constant 6.400000e+01 : f32
    %17 = vector.broadcast %cst_8 : f32 to vector<4x1xf32>
    %18 = arith.mulf %17, %16 : vector<4x1xf32>
    %19 = arith.subf %15, %18 : vector<4x1xf32>
    %cst_9 = arith.constant 1.562500e-02 : f32
    %20 = vector.broadcast %cst_9 : f32 to vector<4x1xf32>
    %21 = arith.mulf %19, %20 : vector<4x1xf32>
    %cst_10 = arith.constant 9.99999974E-6 : f32
    %22 = vector.broadcast %cst_10 : f32 to vector<4x1xf32>
    %23 = arith.addf %21, %22 : vector<4x1xf32>
    %24 = math.rsqrt %23 : vector<4x1xf32>
    %25 = vector.broadcast %24 : vector<4x1xf32> to vector<4x128xf32>
    %26 = arith.mulf %12, %25 : vector<4x128xf32>
    %27 = vector.extract_strided_slice %2 {offsets = [1, 0], sizes = [1, 128], strides = [1, 1]} : vector<3x128xf32> to vector<1x128xf32>
    %28 = vector.broadcast %27 : vector<1x128xf32> to vector<4x128xf32>
    %29 = arith.mulf %26, %28 : vector<4x128xf32>
    %30 = vector.extract_strided_slice %2 {offsets = [2, 0], sizes = [1, 128], strides = [1, 1]} : vector<3x128xf32> to vector<1x128xf32>
    %31 = vector.broadcast %30 : vector<1x128xf32> to vector<4x128xf32>
    %32 = arith.addf %29, %31 : vector<4x128xf32>
    %33 = arith.mulf %32, %32 : vector<4x128xf32>
    %34 = arith.mulf %32, %33 : vector<4x128xf32>
    %cst_11 = arith.constant 4.471500e-02 : f32
    %35 = vector.broadcast %cst_11 : f32 to vector<4x128xf32>
    %36 = arith.mulf %35, %34 : vector<4x128xf32>
    %37 = arith.addf %32, %36 : vector<4x128xf32>
    %cst_12 = arith.constant 0.797884583 : f32
    %38 = vector.broadcast %cst_12 : f32 to vector<4x128xf32>
    %39 = arith.mulf %38, %37 : vector<4x128xf32>
    %40 = math.tanh %39 : vector<4x128xf32>
    %cst_13 = arith.constant 1.000000e+00 : f32
    %41 = vector.broadcast %cst_13 : f32 to vector<4x128xf32>
    %42 = arith.addf %41, %40 : vector<4x128xf32>
    %cst_14 = arith.constant 5.000000e-01 : f32
    %43 = vector.broadcast %cst_14 : f32 to vector<4x128xf32>
    %44 = arith.mulf %43, %42 : vector<4x128xf32>
    %45 = arith.mulf %32, %44 : vector<4x128xf32>
    %c0_15 = arith.constant 0 : index
    %c0_16 = arith.constant 0 : index
    %46 = vector.load %arg4[%c0_15, %c0_16] : memref<128x128xf32, #tpu.memory_space<vmem>>, vector<128x128xf32>
    %c0_17 = arith.constant 0 : index
    %c0_18 = arith.constant 0 : index
    %47 = vector.load %arg5[%c0_17, %c0_18] : memref<3x128xf32, #tpu.memory_space<vmem>>, vector<3x128xf32>
    %cst_19 = arith.constant dense<0.000000e+00> : vector<4x128xf32>
    %48 = tpu.matmul %45, %46, %cst_19 {dimension_numbers = #tpu.dot_dimension_numbers<[1], [0], [0], [1], [0, 0, 1, 1], [], []>} : vector<4x128xf32>, vector<128x128xf32>, vector<4x128xf32> -> vector<4x128xf32>
    %49 = vector.extract_strided_slice %47 {offsets = [0, 0], sizes = [1, 128], strides = [1, 1]} : vector<3x128xf32> to vector<1x128xf32>
    %50 = vector.broadcast %49 : vector<1x128xf32> to vector<4x128xf32>
    %51 = arith.addf %48, %50 : vector<4x128xf32>
    %cst_20 = arith.constant dense<0.000000e+00> : vector<4xf32>
    %52 = vector.multi_reduction <add>, %51, %cst_20 [1] : vector<4x128xf32> to vector<4xf32>
    %53 = vector.shape_cast %52 : vector<4xf32> to vector<4x1xf32>
    %cst_21 = arith.constant 0.020833334 : f32
    %54 = vector.broadcast %cst_21 : f32 to vector<4x1xf32>
    %55 = arith.mulf %53, %54 : vector<4x1xf32>
    %56 = vector.broadcast %55 : vector<4x1xf32> to vector<4x128xf32>
    %57 = arith.subf %51, %56 : vector<4x128xf32>
    %58 = arith.mulf %57, %57 : vector<4x128xf32>
    %cst_22 = arith.constant dense<0.000000e+00> : vector<4xf32>
    %59 = vector.multi_reduction <add>, %58, %cst_22 [1] : vector<4x128xf32> to vector<4xf32>
    %60 = vector.shape_cast %59 : vector<4xf32> to vector<4x1xf32>
    %61 = arith.mulf %55, %55 : vector<4x1xf32>
    %cst_23 = arith.constant 8.000000e+01 : f32
    %62 = vector.broadcast %cst_23 : f32 to vector<4x1xf32>
    %63 = arith.mulf %62, %61 : vector<4x1xf32>
    %64 = arith.subf %60, %63 : vector<4x1xf32>
    %cst_24 = arith.constant 0.020833334 : f32
    %65 = vector.broadcast %cst_24 : f32 to vector<4x1xf32>
    %66 = arith.mulf %64, %65 : vector<4x1xf32>
    %cst_25 = arith.constant 9.99999974E-6 : f32
    %67 = vector.broadcast %cst_25 : f32 to vector<4x1xf32>
    %68 = arith.addf %66, %67 : vector<4x1xf32>
    %69 = math.rsqrt %68 : vector<4x1xf32>
    %70 = vector.broadcast %69 : vector<4x1xf32> to vector<4x128xf32>
    %71 = arith.mulf %57, %70 : vector<4x128xf32>
    %72 = vector.extract_strided_slice %47 {offsets = [1, 0], sizes = [1, 128], strides = [1, 1]} : vector<3x128xf32> to vector<1x128xf32>
    %73 = vector.broadcast %72 : vector<1x128xf32> to vector<4x128xf32>
    %74 = arith.mulf %71, %73 : vector<4x128xf32>
    %75 = vector.extract_strided_slice %47 {offsets = [2, 0], sizes = [1, 128], strides = [1, 1]} : vector<3x128xf32> to vector<1x128xf32>
    %76 = vector.broadcast %75 : vector<1x128xf32> to vector<4x128xf32>
    %77 = arith.addf %74, %76 : vector<4x128xf32>
    %78 = arith.mulf %77, %77 : vector<4x128xf32>
    %79 = arith.mulf %77, %78 : vector<4x128xf32>
    %cst_26 = arith.constant 4.471500e-02 : f32
    %80 = vector.broadcast %cst_26 : f32 to vector<4x128xf32>
    %81 = arith.mulf %80, %79 : vector<4x128xf32>
    %82 = arith.addf %77, %81 : vector<4x128xf32>
    %cst_27 = arith.constant 0.797884583 : f32
    %83 = vector.broadcast %cst_27 : f32 to vector<4x128xf32>
    %84 = arith.mulf %83, %82 : vector<4x128xf32>
    %85 = math.tanh %84 : vector<4x128xf32>
    %cst_28 = arith.constant 1.000000e+00 : f32
    %86 = vector.broadcast %cst_28 : f32 to vector<4x128xf32>
    %87 = arith.addf %86, %85 : vector<4x128xf32>
    %cst_29 = arith.constant 5.000000e-01 : f32
    %88 = vector.broadcast %cst_29 : f32 to vector<4x128xf32>
    %89 = arith.mulf %88, %87 : vector<4x128xf32>
    %90 = arith.mulf %77, %89 : vector<4x128xf32>
    %c0_30 = arith.constant 0 : index
    %c0_31 = arith.constant 0 : index
    %91 = vector.load %arg6[%c0_30, %c0_31] : memref<128x128xf32, #tpu.memory_space<vmem>>, vector<128x128xf32>
    %c0_32 = arith.constant 0 : index
    %c0_33 = arith.constant 0 : index
    %92 = vector.load %arg7[%c0_32, %c0_33] : memref<3x128xf32, #tpu.memory_space<vmem>>, vector<3x128xf32>
    %cst_34 = arith.constant dense<0.000000e+00> : vector<4x128xf32>
    %93 = tpu.matmul %90, %91, %cst_34 {dimension_numbers = #tpu.dot_dimension_numbers<[1], [0], [0], [1], [0, 0, 1, 1], [], []>} : vector<4x128xf32>, vector<128x128xf32>, vector<4x128xf32> -> vector<4x128xf32>
    %94 = vector.extract_strided_slice %92 {offsets = [0, 0], sizes = [1, 128], strides = [1, 1]} : vector<3x128xf32> to vector<1x128xf32>
    %95 = vector.broadcast %94 : vector<1x128xf32> to vector<4x128xf32>
    %96 = arith.addf %93, %95 : vector<4x128xf32>
    %cst_35 = arith.constant dense<0.000000e+00> : vector<4xf32>
    %97 = vector.multi_reduction <add>, %96, %cst_35 [1] : vector<4x128xf32> to vector<4xf32>
    %98 = vector.shape_cast %97 : vector<4xf32> to vector<4x1xf32>
    %cst_36 = arith.constant 0.020833334 : f32
    %99 = vector.broadcast %cst_36 : f32 to vector<4x1xf32>
    %100 = arith.mulf %98, %99 : vector<4x1xf32>
    %101 = vector.broadcast %100 : vector<4x1xf32> to vector<4x128xf32>
    %102 = arith.subf %96, %101 : vector<4x128xf32>
    %103 = arith.mulf %102, %102 : vector<4x128xf32>
    %cst_37 = arith.constant dense<0.000000e+00> : vector<4xf32>
    %104 = vector.multi_reduction <add>, %103, %cst_37 [1] : vector<4x128xf32> to vector<4xf32>
    %105 = vector.shape_cast %104 : vector<4xf32> to vector<4x1xf32>
    %106 = arith.mulf %100, %100 : vector<4x1xf32>
    %cst_38 = arith.constant 8.000000e+01 : f32
    %107 = vector.broadcast %cst_38 : f32 to vector<4x1xf32>
    %108 = arith.mulf %107, %106 : vector<4x1xf32>
    %109 = arith.subf %105, %108 : vector<4x1xf32>
    %cst_39 = arith.constant 0.020833334 : f32
    %110 = vector.broadcast %cst_39 : f32 to vector<4x1xf32>
    %111 = arith.mulf %109, %110 : vector<4x1xf32>
    %cst_40 = arith.constant 9.99999974E-6 : f32
    %112 = vector.broadcast %cst_40 : f32 to vector<4x1xf32>
    %113 = arith.addf %111, %112 : vector<4x1xf32>
    %114 = math.rsqrt %113 : vector<4x1xf32>
    %115 = vector.broadcast %114 : vector<4x1xf32> to vector<4x128xf32>
    %116 = arith.mulf %102, %115 : vector<4x128xf32>
    %117 = vector.extract_strided_slice %92 {offsets = [1, 0], sizes = [1, 128], strides = [1, 1]} : vector<3x128xf32> to vector<1x128xf32>
    %118 = vector.broadcast %117 : vector<1x128xf32> to vector<4x128xf32>
    %119 = arith.mulf %116, %118 : vector<4x128xf32>
    %120 = vector.extract_strided_slice %92 {offsets = [2, 0], sizes = [1, 128], strides = [1, 1]} : vector<3x128xf32> to vector<1x128xf32>
    %121 = vector.broadcast %120 : vector<1x128xf32> to vector<4x128xf32>
    %122 = arith.addf %119, %121 : vector<4x128xf32>
    %123 = arith.mulf %122, %122 : vector<4x128xf32>
    %124 = arith.mulf %122, %123 : vector<4x128xf32>
    %cst_41 = arith.constant 4.471500e-02 : f32
    %125 = vector.broadcast %cst_41 : f32 to vector<4x128xf32>
    %126 = arith.mulf %125, %124 : vector<4x128xf32>
    %127 = arith.addf %122, %126 : vector<4x128xf32>
    %cst_42 = arith.constant 0.797884583 : f32
    %128 = vector.broadcast %cst_42 : f32 to vector<4x128xf32>
    %129 = arith.mulf %128, %127 : vector<4x128xf32>
    %130 = math.tanh %129 : vector<4x128xf32>
    %cst_43 = arith.constant 1.000000e+00 : f32
    %131 = vector.broadcast %cst_43 : f32 to vector<4x128xf32>
    %132 = arith.addf %131, %130 : vector<4x128xf32>
    %cst_44 = arith.constant 5.000000e-01 : f32
    %133 = vector.broadcast %cst_44 : f32 to vector<4x128xf32>
    %134 = arith.mulf %133, %132 : vector<4x128xf32>
    %135 = arith.mulf %122, %134 : vector<4x128xf32>
    %136 = arith.addf %135, %90 : vector<4x128xf32>
    %c0_45 = arith.constant 0 : index
    %c0_46 = arith.constant 0 : index
    %137 = vector.load %arg8[%c0_45, %c0_46] : memref<128x128xf32, #tpu.memory_space<vmem>>, vector<128x128xf32>
    %c0_47 = arith.constant 0 : index
    %c0_48 = arith.constant 0 : index
    %138 = vector.load %arg9[%c0_47, %c0_48] : memref<3x128xf32, #tpu.memory_space<vmem>>, vector<3x128xf32>
    %cst_49 = arith.constant dense<0.000000e+00> : vector<4x128xf32>
    %139 = tpu.matmul %136, %137, %cst_49 {dimension_numbers = #tpu.dot_dimension_numbers<[1], [0], [0], [1], [0, 0, 1, 1], [], []>} : vector<4x128xf32>, vector<128x128xf32>, vector<4x128xf32> -> vector<4x128xf32>
    %140 = vector.extract_strided_slice %138 {offsets = [0, 0], sizes = [1, 128], strides = [1, 1]} : vector<3x128xf32> to vector<1x128xf32>
    %141 = vector.broadcast %140 : vector<1x128xf32> to vector<4x128xf32>
    %142 = arith.addf %139, %141 : vector<4x128xf32>
    %cst_50 = arith.constant dense<0.000000e+00> : vector<4xf32>
    %143 = vector.multi_reduction <add>, %142, %cst_50 [1] : vector<4x128xf32> to vector<4xf32>
    %144 = vector.shape_cast %143 : vector<4xf32> to vector<4x1xf32>
    %cst_51 = arith.constant 3.125000e-02 : f32
    %145 = vector.broadcast %cst_51 : f32 to vector<4x1xf32>
    %146 = arith.mulf %144, %145 : vector<4x1xf32>
    %147 = vector.broadcast %146 : vector<4x1xf32> to vector<4x128xf32>
    %148 = arith.subf %142, %147 : vector<4x128xf32>
    %149 = arith.mulf %148, %148 : vector<4x128xf32>
    %cst_52 = arith.constant dense<0.000000e+00> : vector<4xf32>
    %150 = vector.multi_reduction <add>, %149, %cst_52 [1] : vector<4x128xf32> to vector<4xf32>
    %151 = vector.shape_cast %150 : vector<4xf32> to vector<4x1xf32>
    %152 = arith.mulf %146, %146 : vector<4x1xf32>
    %cst_53 = arith.constant 9.600000e+01 : f32
    %153 = vector.broadcast %cst_53 : f32 to vector<4x1xf32>
    %154 = arith.mulf %153, %152 : vector<4x1xf32>
    %155 = arith.subf %151, %154 : vector<4x1xf32>
    %cst_54 = arith.constant 3.125000e-02 : f32
    %156 = vector.broadcast %cst_54 : f32 to vector<4x1xf32>
    %157 = arith.mulf %155, %156 : vector<4x1xf32>
    %cst_55 = arith.constant 9.99999974E-6 : f32
    %158 = vector.broadcast %cst_55 : f32 to vector<4x1xf32>
    %159 = arith.addf %157, %158 : vector<4x1xf32>
    %160 = math.rsqrt %159 : vector<4x1xf32>
    %161 = vector.broadcast %160 : vector<4x1xf32> to vector<4x128xf32>
    %162 = arith.mulf %148, %161 : vector<4x128xf32>
    %163 = vector.extract_strided_slice %138 {offsets = [1, 0], sizes = [1, 128], strides = [1, 1]} : vector<3x128xf32> to vector<1x128xf32>
    %164 = vector.broadcast %163 : vector<1x128xf32> to vector<4x128xf32>
    %165 = arith.mulf %162, %164 : vector<4x128xf32>
    %166 = vector.extract_strided_slice %138 {offsets = [2, 0], sizes = [1, 128], strides = [1, 1]} : vector<3x128xf32> to vector<1x128xf32>
    %167 = vector.broadcast %166 : vector<1x128xf32> to vector<4x128xf32>
    %168 = arith.addf %165, %167 : vector<4x128xf32>
    %169 = arith.mulf %168, %168 : vector<4x128xf32>
    %170 = arith.mulf %168, %169 : vector<4x128xf32>
    %cst_56 = arith.constant 4.471500e-02 : f32
    %171 = vector.broadcast %cst_56 : f32 to vector<4x128xf32>
    %172 = arith.mulf %171, %170 : vector<4x128xf32>
    %173 = arith.addf %168, %172 : vector<4x128xf32>
    %cst_57 = arith.constant 0.797884583 : f32
    %174 = vector.broadcast %cst_57 : f32 to vector<4x128xf32>
    %175 = arith.mulf %174, %173 : vector<4x128xf32>
    %176 = math.tanh %175 : vector<4x128xf32>
    %cst_58 = arith.constant 1.000000e+00 : f32
    %177 = vector.broadcast %cst_58 : f32 to vector<4x128xf32>
    %178 = arith.addf %177, %176 : vector<4x128xf32>
    %cst_59 = arith.constant 5.000000e-01 : f32
    %179 = vector.broadcast %cst_59 : f32 to vector<4x128xf32>
    %180 = arith.mulf %179, %178 : vector<4x128xf32>
    %181 = arith.mulf %168, %180 : vector<4x128xf32>
    %c0_60 = arith.constant 0 : index
    %c0_61 = arith.constant 0 : index
    %182 = vector.load %arg10[%c0_60, %c0_61] : memref<128x16xf32, #tpu.memory_space<vmem>>, vector<128x16xf32>
    %c0_62 = arith.constant 0 : index
    %c0_63 = arith.constant 0 : index
    %183 = vector.load %arg11[%c0_62, %c0_63] : memref<1x16xf32, #tpu.memory_space<vmem>>, vector<1x16xf32>
    %cst_64 = arith.constant dense<0.000000e+00> : vector<4x16xf32>
    %184 = tpu.matmul %181, %182, %cst_64 {dimension_numbers = #tpu.dot_dimension_numbers<[1], [0], [0], [1], [0, 0, 1, 1], [], []>} : vector<4x128xf32>, vector<128x16xf32>, vector<4x16xf32> -> vector<4x16xf32>
    %185 = vector.broadcast %183 : vector<1x16xf32> to vector<4x16xf32>
    %186 = arith.addf %184, %185 : vector<4x16xf32>
    %c0_65 = arith.constant 0 : index
    %c0_66 = arith.constant 0 : index
    %187 = vector.load %arg12[%c0_65, %c0_66] : memref<4x16xf32, #tpu.memory_space<vmem>>, vector<4x16xf32>
    tpu.vector_store %arg12[%c0_65, %c0_66], %186 {strides = array<i32>} : memref<4x16xf32, #tpu.memory_space<vmem>>, vector<4x16xf32>,
    return
  }
  func.func @transform_0(%arg0: i32) -> (i32, i32) {
    %c0_i32 = arith.constant 0 : i32
    %c0_i32_0 = arith.constant 0 : i32
    return %arg0, %c0_i32 : i32, i32
  }
  func.func @transform_1(%arg0: i32) -> (i32, i32) {
    %c0_i32 = arith.constant 0 : i32
    %c0_i32_0 = arith.constant 0 : i32
    %c0_i32_1 = arith.constant 0 : i32
    return %c0_i32, %c0_i32_0 : i32, i32
  }
  func.func @transform_2(%arg0: i32) -> (i32, i32) {
    %c0_i32 = arith.constant 0 : i32
    %c0_i32_0 = arith.constant 0 : i32
    %c0_i32_1 = arith.constant 0 : i32
    return %c0_i32, %c0_i32_0 : i32, i32
  }
  func.func @transform_3(%arg0: i32) -> (i32, i32) {
    %c0_i32 = arith.constant 0 : i32
    %c0_i32_0 = arith.constant 0 : i32
    %c0_i32_1 = arith.constant 0 : i32
    return %c0_i32, %c0_i32_0 : i32, i32
  }
  func.func @transform_4(%arg0: i32) -> (i32, i32) {
    %c0_i32 = arith.constant 0 : i32
    %c0_i32_0 = arith.constant 0 : i32
    %c0_i32_1 = arith.constant 0 : i32
    return %c0_i32, %c0_i32_0 : i32, i32
  }
  func.func @transform_5(%arg0: i32) -> (i32, i32) {
    %c0_i32 = arith.constant 0 : i32
    %c0_i32_0 = arith.constant 0 : i32
    %c0_i32_1 = arith.constant 0 : i32
    return %c0_i32, %c0_i32_0 : i32, i32
  }
  func.func @transform_6(%arg0: i32) -> (i32, i32) {
    %c0_i32 = arith.constant 0 : i32
    %c0_i32_0 = arith.constant 0 : i32
    %c0_i32_1 = arith.constant 0 : i32
    return %c0_i32, %c0_i32_0 : i32, i32
  }
  func.func @transform_7(%arg0: i32) -> (i32, i32) {
    %c0_i32 = arith.constant 0 : i32
    %c0_i32_0 = arith.constant 0 : i32
    %c0_i32_1 = arith.constant 0 : i32
    return %c0_i32, %c0_i32_0 : i32, i32
  }
  func.func @transform_8(%arg0: i32) -> (i32, i32) {
    %c0_i32 = arith.constant 0 : i32
    %c0_i32_0 = arith.constant 0 : i32
    %c0_i32_1 = arith.constant 0 : i32
    return %c0_i32, %c0_i32_0 : i32, i32
  }
  func.func @transform_9(%arg0: i32) -> (i32, i32) {
    %c0_i32 = arith.constant 0 : i32
    %c0_i32_0 = arith.constant 0 : i32
    %c0_i32_1 = arith.constant 0 : i32
    return %c0_i32, %c0_i32_0 : i32, i32
  }
  func.func @transform_10(%arg0: i32) -> (i32, i32) {
    %c0_i32 = arith.constant 0 : i32
    %c0_i32_0 = arith.constant 0 : i32
    %c0_i32_1 = arith.constant 0 : i32
    return %c0_i32, %c0_i32_0 : i32, i32
  }
  func.func @transform_11(%arg0: i32) -> (i32, i32) {
    %c0_i32 = arith.constant 0 : i32
    %c0_i32_0 = arith.constant 0 : i32
    return %arg0, %c0_i32 : i32, i32
  }
}

</mosaic_0001>

<bundles_post_ra>
// kernel: tpu_custom_call.1
= control target key start
LH: loop header
LB: loop body
LE: loop exit
PB: predicated region body
PF: predicated region fallthrough
CT: control target
= control target key end

     0   :  { %16 = vsyncpa [#allocation3], 0  ;;  %s795_s0 = inlined_call_operand.vmem [shape: f32[4,32], index: 0, kind: input, shape index: {}]   ;;  %s796_s1 = inlined_call_operand.hbm [shape: f32[32,128], index: 1, kind: input, shape index: {}]   ;;  %s797_s2 = inlined_call_operand.vmem [shape: f32[3,128], index: 2, kind: input, shape index: {}]   ;;  %s798_s3 = inlined_call_operand.vmem [shape: f32[128,128], index: 3, kind: input, shape index: {}]   ;;  %s799_s4 = inlined_call_operand.vmem [shape: f32[3,128], index: 4, kind: input, shape index: {}]   ;;  %s800_s5 = inlined_call_operand.hbm [shape: f32[128,128], index: 5, kind: input, shape index: {}]   ;;  %s801_s6 = inlined_call_operand.vmem [shape: f32[3,128], index: 6, kind: input, shape index: {}]   ;;  %s802_s7 = inlined_call_operand.hbm [shape: f32[128,128], index: 7, kind: input, shape index: {}]   ;;  %s803_s8 = inlined_call_operand.vmem [shape: f32[3,128], index: 8, kind: input, shape index: {}]   ;;  %s804_s9 = inlined_call_operand.vmem [shape: f32[128,16], index: 9, kind: input, shape index: {}]   ;;  %s805_s10 = inlined_call_operand.vmem [shape: f32[1,16], index: 10, kind: input, shape index: {}]   ;;  %s806_s11 = inlined_call_operand.hbm [shape: f32[4,16], index: 11, kind: output, shape index: {}]  }
   0x1   :  { %17 = vsyncpa [#allocation6], 0 }
   0x2   :  { %18 = vsyncpa [#allocation4], 0  ;;  %s44_s19 = sshll.u32 %s800_s5, 4  ;;  %s571_s20 = smov [#allocation5]   ;;  %s45_s19 = int_to_ptr.hbm [resolvable:$true] %s44_s19 }
   0x3   :  { %s46_s21 = sshll.u32 %s571_s20, 4  ;;  %s25_s24 = sshll.u32 %s796_s1, 4  ;;  %s47_s21 = int_to_ptr.vmem [resolvable:$true] %s46_s21  ;;  %s26_s24 = int_to_ptr.hbm [resolvable:$true] %s25_s24 }
   0x4   :  { %s572_s25 = smov 128   ;;  %s573_s26 = smov 8  }
   0x5   :  { %52 = dma.hbm_to_vmem [thread:$0]  %s45_s19, 2048, %s47_s21, [#allocation6], %s572_s25, %s572_s25, %s573_s26  }
   0x6   :  { %s574_s27 = smov [#allocation2]   ;;  %s59_s12 = sshll.u32 %s802_s7, 4  ;;  %s60_s12 = int_to_ptr.hbm [resolvable:$true] %s59_s12 }
   0x7   :  { %s27_s28 = sshll.u32 %s574_s27, 4  ;;  %s575_s5 = smov [#allocation7]   ;;  %s28_s28 = int_to_ptr.vmem [resolvable:$true] %s27_s28 }
   0x8   :  { %33 = dma.hbm_to_vmem [thread:$0]  %s26_s24, 512, %s28_s28, [#allocation3], %s572_s25, %s572_s25, %s573_s26  }
   0x9   :  { %s61_s13 = sshll.u32 %s575_s5, 4  ;;  %s62_s13 = int_to_ptr.vmem [resolvable:$true] %s61_s13 }
   0xa   :  { %67 = dma.hbm_to_vmem [thread:$0]  %s60_s12, 2048, %s62_s13, [#allocation6], %s572_s25, %s572_s25, %s573_s26  }
   0xb   :  { %565 = dma.done.wait [#allocation3], 512  }
   0xc   :  { %566 = vsyncadd [#allocation3], 4294966784 }
   0xd   :  { %567 = dma.done.wait [#allocation6], 4096  }
   0xe   :  { %568 = vsyncadd [#allocation6], 4294963200  ;;  %v90_v0 = vld [vmem:[#allocation2 + $0x18] sm:$0xff]  ;;  %v89_v1 = vld [vmem:[#allocation2 + $0x10] sm:$0xff]  ;;  %vm93_vm0 = vcmask 261120   ;;  %vm117_vm1 = vcmask 1043456  }
   0xf   :  { %109 = vmatpush.msra.mxu0 %v90_v0  ;;  %v88_v2 = vld [vmem:[#allocation2 + $0x8] sm:$0xff]  ;;  %v87_v3 = vld [vmem:[#allocation2] sm:$0xff]  ;;  %v171_v15 = vld [vmem:[%s798_s3 + $0x78] sm:$0xff]  ;;  %s576_s29 = smov [#allocation8]   ;;  %s434_s13 = sshll.u32 %s806_s11, 4  ;;  %vm425_vm14 = vcmask 125952   ;;  %s435_s13 = int_to_ptr.hbm [resolvable:$true] %s434_s13 }
  0x10   :  { %v86_v4 = vld [vmem:[%s795_s0] sm:$0xf]  ;;  %174 = vmatpush.msra.mxu1 %v171_v15  ;;  %v170_v16 = vld [vmem:[%s798_s3 + $0x70] sm:$0xff]  ;;  %v169_v17 = vld [vmem:[%s798_s3 + $0x68] sm:$0xff]  ;;  %s432_s30 = sshll.u32 %s576_s29, 4  ;;  %s433_s30 = int_to_ptr.vmem [resolvable:$true] %s432_s30 }
  0x11   :  { %110 = vmatpush.msra.mxu0 %v89_v1  ;;  %v652_v5 = vld [vmem:[%s797_s2] sm:$0x7]  ;;  %v167_v20 = vld [vmem:[%s798_s3 + $0x58] sm:$0xff]  ;;  %v166_v21 = vld [vmem:[%s798_s3 + $0x50] sm:$0xff] }
  0x12   :  { %v92_v6 = vperm.slane %v652_v5, 0  ;;  %175 = vmatpush.msra.mxu1 %v170_v16  ;;  %v168_v18 = vld [vmem:[%s798_s3 + $0x60] sm:$0xff]  ;;  %v165_v24 = vld [vmem:[%s798_s3 + $0x48] sm:$0xff]  ;;  %v163_v28 = vld [vmem:[%s798_s3 + $0x38] sm:$0xff]  ;;  %v143_v43 = vperm.slane %v652_v5, 1  ;;  %v145_v45 = vperm.slane %v652_v5, 2 }
  0x13   :  { %111 = vmatpush.msra.mxu0 %v88_v2  ;;  %v164_v26 = vld [vmem:[%s798_s3 + $0x40] sm:$0xff]  ;;  %v162_v30 = vld [vmem:[%s798_s3 + $0x30] sm:$0xff]  ;;  %v161_v31 = vld [vmem:[%s798_s3 + $0x28] sm:$0xff] }
  0x14   :  { %176 = vmatpush.msra.mxu1 %v169_v17  ;;  %v160_v32 = vld [vmem:[%s798_s3 + $0x20] sm:$0xff]  ;;  %v159_v33 = vld [vmem:[%s798_s3 + $0x18] sm:$0xff]  ;;  %v158_v36 = vld [vmem:[%s798_s3 + $0x10] sm:$0xff] }
  0x15   :  { %112 = vmatpush.msra.mxu0 %v87_v3  ;;  %v157_v38 = vld [vmem:[%s798_s3 + $0x8] sm:$0xff]  ;;  %v156_v40 = vld [vmem:[%s798_s3] sm:$0xff]  ;;  %v246_v5 = vld [vmem:[#allocation5 + $0x70] sm:$0xff] }
  0x16   :  { %445 = vmatmul.msk.f32.vlgmr.msra.gmra.mxu0 %vm93_vm0, %v86_v4  ;;  %177 = vmatpush.msra.mxu1 %v168_v18  ;;  %v710_v58 = vld [vmem:[%s799_s4] sm:$0x7]  ;;  %v247_v4 = vld [vmem:[#allocation5 + $0x78] sm:$0xff] }
  0x17   :  { %v173_v59 = vperm.slane %v710_v58, 0  ;;  %250 = vmatpush.msra.mxu2 %v247_v4  ;;  %v240_v15 = vld [vmem:[#allocation5 + $0x40] sm:$0xff]  ;;  %v239_v17 = vld [vmem:[#allocation5 + $0x38] sm:$0xff] }
  0x18   :  { %178 = vmatpush.msra.mxu1 %v167_v20  ;;  %v237_v20 = vld [vmem:[#allocation5 + $0x28] sm:$0xff] }
  0x19   :  { %251 = vmatpush.msra.mxu2 %v246_v5  ;;  %v317_v5 = vld [vmem:[#allocation7 + $0x40] sm:$0xff] }
  0x1a   :  { %179 = vmatpush.msra.mxu1 %v166_v21  ;;  %v236_v21 = vld [vmem:[#allocation5 + $0x20] sm:$0xff] }
  0x1c   :  { %180 = vmatpush.msra.mxu1 %v165_v24 }
  0x1e   :  { %181 = vmatpush.msra.mxu1 %v164_v26 }
  0x20   :  { %182 = vmatpush.msra.mxu1 %v163_v28 }
  0x22   :  { %183 = vmatpush.msra.mxu1 %v162_v30 }
  0x24   :  { %184 = vmatpush.msra.mxu1 %v161_v31 }
  0x26   :  { %185 = vmatpush.msra.mxu1 %v160_v32  ;;  %v219_v32 = vperm.slane %v710_v58, 1 }
  0x28   :  { %186 = vmatpush.msra.mxu1 %v159_v33 }
  0x2a   :  { %187 = vmatpush.msra.mxu1 %v158_v36 }
  0x2c   :  { %188 = vmatpush.msra.mxu1 %v157_v38 }
  0x2e   :  { %189 = vmatpush.msra.mxu1 %v156_v40 }
  0x93   :  { %v114_v7 = vpop.f32.mrf.mxu0 }
  0x94   :  { %v115_v8 = vadd.f32 %v114_v7, %v92_v6  ;;  %v245_v6 = vld [vmem:[#allocation5 + $0x68] sm:$0xff]  ;;  %v244_v7 = vld [vmem:[#allocation5 + $0x60] sm:$0xff] }
  0x95   :  { %252 = vmatpush.msra.mxu2 %v245_v6 }
  0x96   :  { %v118_v9 = vsel %vm117_vm1, %v115_v8, 0.0 }
  0x97   :  { %119 = vadd.xlane.f32.xlu0 %v118_v9  ;;  %v243_v9 = vld [vmem:[#allocation5 + $0x58] sm:$0xff]  ;;  %253 = vmatpush.msra.mxu2 %v244_v7 }
  0x98   :  { %v316_v7 = vld [vmem:[#allocation7 + $0x38] sm:$0xff] }
  0x99   :  { %254 = vmatpush.msra.mxu2 %v243_v9  ;;  %v314_v9 = vld [vmem:[#allocation7 + $0x28] sm:$0xff] }
 0x10a   :  { %v120_v10 = vpop.xlane.xlu0 %119 }
 0x10b   :  { %v121_v11 = vmul.f32 0.015625, %v120_v10  ;;  %v242_v10 = vld [vmem:[#allocation5 + $0x50] sm:$0xff] }
 0x10c   :  { %255 = vmatpush.msra.mxu2 %v242_v10  ;;  %v313_v10 = vld [vmem:[#allocation7 + $0x20] sm:$0xff] }
 0x10d   :  { %v122_v12 = vsub.f32 %v115_v8, %v121_v11  ;;  %v127_v19 = vmul.f32 %v121_v11, %v121_v11 }
 0x10f   :  { %v123_v13 = vmul.f32 %v122_v12, %v122_v12  ;;  %v128_v22 = vmul.f32 64.0, %v127_v19  ;;  %v238_v19 = vld [vmem:[#allocation5 + $0x30] sm:$0xff] }
 0x111   :  { %v124_v14 = vsel %vm117_vm1, %v123_v13, 0.0  ;;  %v241_v13 = vld [vmem:[#allocation5 + $0x48] sm:$0xff] }
 0x112   :  { %125 = vadd.xlane.f32.xlu0 %v124_v14  ;;  %256 = vmatpush.msra.mxu2 %v241_v13  ;;  %v312_v13 = vld [vmem:[#allocation7 + $0x18] sm:$0xff] }
 0x114   :  { %257 = vmatpush.msra.mxu2 %v240_v15  ;;  %v311_v15 = vld [vmem:[#allocation7 + $0x10] sm:$0xff] }
 0x116   :  { %258 = vmatpush.msra.mxu2 %v239_v17  ;;  %v310_v17 = vld [vmem:[#allocation7 + $0x8] sm:$0xff] }
 0x118   :  { %259 = vmatpush.msra.mxu2 %v238_v19  ;;  %v309_v19 = vld [vmem:[#allocation7] sm:$0xff] }
 0x11a   :  { %260 = vmatpush.msra.mxu2 %v237_v20 }
 0x11c   :  { %261 = vmatpush.msra.mxu2 %v236_v21 }
 0x185   :  { %v126_v23 = vpop.xlane.xlu0 %125 }
 0x186   :  { %v129_v25 = vsub.f32 %v126_v23, %v128_v22  ;;  %v235_v22 = vld [vmem:[#allocation5 + $0x18] sm:$0xff] }
 0x187   :  { %262 = vmatpush.msra.mxu2 %v235_v22 }
 0x188   :  { %v130_v27 = vmul.f32 0.015625, %v129_v25  ;;  %v234_v25 = vld [vmem:[#allocation5 + $0x10] sm:$0xff] }
 0x189   :  { %263 = vmatpush.msra.mxu2 %v234_v25 }
 0x18a   :  { %v131_v29 = vadd.f32 1e-05, %v130_v27  ;;  %v233_v27 = vld [vmem:[#allocation5 + $0x8] sm:$0xff] }
 0x18b   :  { %264 = vmatpush.msra.mxu2 %v233_v27 }
 0x18c   :  { %453 = vrsqrt.f32 %v131_v29  ;;  %vm138_vm3 = vweird.f32 %v131_v29 }
 0x192   :  { %v454_v34 = vpop.eup %453 }
 0x193   :  { %v133_v35 = vmul.f32 %v454_v34, %v131_v29  ;;  %vm139_vm2 = vweird.f32 %v454_v34  ;;  %v232_v29 = vld [vmem:[#allocation5] sm:$0xff] }
 0x194   :  { %vm140_vm4 = vmor %vm138_vm3, %vm139_vm2  ;;  %265 = vmatpush.msra.mxu2 %v232_v29 }
 0x195   :  { %v134_v37 = vmul.f32 %v454_v34, %v133_v35 }
 0x197   :  { %v135_v39 = vmul.f32 0.5, %v134_v37 }
 0x199   :  { %v136_v41 = vsub.f32 1.5, %v135_v39 }
 0x19b   :  { %v137_v42 = vmul.f32 %v454_v34, %v136_v41 }
 0x19d   :  { %v141_v44 = vsel %vm140_vm4, %v454_v34, %v137_v42  ;;  %v221_v34 = vperm.slane %v710_v58, 2  ;;  %v323_v58 = vld [vmem:[#allocation7 + $0x70] sm:$0xff] }
 0x19e   :  { %v142_v46 = vmul.f32 %v141_v44, %v122_v12 }
 0x1a0   :  { %v144_v47 = vmul.f32 %v143_v43, %v142_v46 }
 0x1a2   :  { %v146_v48 = vadd.f32 %v145_v45, %v144_v47  ;;  %v723_v47 = vld [vmem:[%s801_s6] sm:$0x7] }
 0x1a3   :  { %v295_v21 = vperm.slane %v723_v47, 1 }
 0x1a4   :  { %v147_v49 = vmul.f32 %v146_v48, %v146_v48 }
 0x1a6   :  { %v148_v50 = vmul.f32 %v147_v49, %v146_v48 }
 0x1a8   :  { %v149_v51 = vmul.f32 0.044715, %v148_v50 }
 0x1aa   :  { %v150_v52 = vadd.f32 %v149_v51, %v146_v48 }
 0x1ac   :  { %v151_v53 = vmul.f32 0.7978846, %v150_v52 }
 0x1ae   :  { %455 = vtanh.f32 %v151_v53 }
 0x1b4   :  { %v456_v54 = vpop.eup %455 }
 0x1b5   :  { %v153_v55 = vadd.f32 1.0, %v456_v54 }
 0x1b7   :  { %v154_v56 = vmul.f32 0.5, %v153_v55 }
 0x1b9   :  { %v155_v57 = vmul.f32 %v154_v56, %v146_v48  ;;  %v249_v48 = vperm.slane %v723_v47, 0 }
 0x1bb   :  { %190 = vmatmul.f32.vlgmr.msra.gmra.mxu1 %v155_v57  ;;  %v324_v57 = vld [vmem:[#allocation7 + $0x78] sm:$0xff] }
 0x1bc   :  { %327 = vmatpush.msra.mxu3 %v324_v57 }
 0x1be   :  { %328 = vmatpush.msra.mxu3 %v323_v58  ;;  %v393_v58 = vld [vmem:[%s804_s9 + $0x40] sm:$0xff] }
 0x238   :  { %v191_v60 = vpop.f32.mrf.mxu1 }
 0x239   :  { %v192_v61 = vadd.f32 %v191_v60, %v173_v59  ;;  %v322_v60 = vld [vmem:[#allocation7 + $0x68] sm:$0xff] }
 0x23a   :  { %329 = vmatpush.msra.mxu3 %v322_v60  ;;  %v392_v60 = vld [vmem:[%s804_s9 + $0x38] sm:$0xff] }
 0x23b   :  { %v194_v62 = vsel %vm117_vm1, %v192_v61, 0.0 }
 0x23c   :  { %195 = vadd.xlane.f32.xlu1 %v194_v62  ;;  %v320_v62 = vld [vmem:[#allocation7 + $0x58] sm:$0xff] }
 0x2af   :  { %v196_v63 = vpop.xlane.xlu1 %195 }
 0x2b0   :  { %v197_v0 = vmul.f32 0.020833334, %v196_v63 }
 0x2b2   :  { %v198_v1 = vsub.f32 %v192_v61, %v197_v0  ;;  %v203_v8 = vmul.f32 %v197_v0, %v197_v0  ;;  %v321_v61 = vld [vmem:[#allocation7 + $0x60] sm:$0xff] }
 0x2b3   :  { %330 = vmatpush.msra.mxu3 %v321_v61 }
 0x2b4   :  { %v199_v2 = vmul.f32 %v198_v1, %v198_v1  ;;  %v204_v11 = vmul.f32 80.0, %v203_v8  ;;  %v315_v8 = vld [vmem:[#allocation7 + $0x30] sm:$0xff] }
 0x2b5   :  { %331 = vmatpush.msra.mxu3 %v320_v62  ;;  %v391_v62 = vld [vmem:[%s804_s9 + $0x30] sm:$0xff] }
 0x2b6   :  { %v200_v3 = vsel %vm117_vm1, %v199_v2, 0.0 }
 0x2b7   :  { %201 = vadd.xlane.f32.xlu1 %v200_v3  ;;  %v318_v3 = vld [vmem:[#allocation7 + $0x48] sm:$0xff] }
 0x32a   :  { %v202_v12 = vpop.xlane.xlu1 %201 }
 0x32b   :  { %v205_v14 = vsub.f32 %v202_v12, %v204_v11 }
 0x32d   :  { %v206_v16 = vmul.f32 0.020833334, %v205_v14 }
 0x32f   :  { %v207_v18 = vadd.f32 1e-05, %v206_v16 }
 0x331   :  { %457 = vrsqrt.f32 %v207_v18  ;;  %vm214_vm6 = vweird.f32 %v207_v18 }
 0x337   :  { %v458_v23 = vpop.eup %457 }
 0x338   :  { %v209_v24 = vmul.f32 %v458_v23, %v207_v18  ;;  %vm215_vm5 = vweird.f32 %v458_v23 }
 0x339   :  { %vm216_vm7 = vmor %vm214_vm6, %vm215_vm5 }
 0x33a   :  { %v210_v26 = vmul.f32 %v458_v23, %v209_v24 }
 0x33c   :  { %v211_v28 = vmul.f32 0.5, %v210_v26 }
 0x33e   :  { %v212_v30 = vsub.f32 1.5, %v211_v28 }
 0x340   :  { %v213_v31 = vmul.f32 %v458_v23, %v212_v30 }
 0x342   :  { %v217_v33 = vsel %vm216_vm7, %v458_v23, %v213_v31  ;;  %v297_v23 = vperm.slane %v723_v47, 2 }
 0x343   :  { %v218_v35 = vmul.f32 %v217_v33, %v198_v1  ;;  %v319_v1 = vld [vmem:[#allocation7 + $0x50] sm:$0xff] }
 0x344   :  { %332 = vmatpush.msra.mxu3 %v319_v1  ;;  %v388_v1 = vld [vmem:[%s804_s9 + $0x18] sm:$0xff] }
 0x345   :  { %v220_v36 = vmul.f32 %v219_v32, %v218_v35 }
 0x346   :  { %333 = vmatpush.msra.mxu3 %v318_v3 }
 0x347   :  { %v222_v37 = vadd.f32 %v221_v34, %v220_v36 }
 0x348   :  { %334 = vmatpush.msra.mxu3 %v317_v5 }
 0x349   :  { %v223_v38 = vmul.f32 %v222_v37, %v222_v37 }
 0x34a   :  { %335 = vmatpush.msra.mxu3 %v316_v7 }
 0x34b   :  { %v224_v39 = vmul.f32 %v223_v38, %v222_v37 }
 0x34c   :  { %336 = vmatpush.msra.mxu3 %v315_v8  ;;  %v385_v8 = vld [vmem:[%s804_s9] sm:$0xff] }
 0x34d   :  { %v225_v40 = vmul.f32 0.044715, %v224_v39 }
 0x34e   :  { %337 = vmatpush.msra.mxu3 %v314_v9 }
 0x34f   :  { %v226_v41 = vadd.f32 %v225_v40, %v222_v37 }
 0x350   :  { %338 = vmatpush.msra.mxu3 %v313_v10 }
 0x351   :  { %v227_v42 = vmul.f32 0.7978846, %v226_v41 }
 0x352   :  { %339 = vmatpush.msra.mxu3 %v312_v13 }
 0x353   :  { %459 = vtanh.f32 %v227_v42 }
 0x354   :  { %340 = vmatpush.msra.mxu3 %v311_v15 }
 0x356   :  { %341 = vmatpush.msra.mxu3 %v310_v17 }
 0x358   :  { %342 = vmatpush.msra.mxu3 %v309_v19 }
 0x359   :  { %v460_v43 = vpop.eup %459 }
 0x35a   :  { %v229_v44 = vadd.f32 1.0, %v460_v43 }
 0x35c   :  { %v230_v45 = vmul.f32 0.5, %v229_v44 }
 0x35e   :  { %v717_v46 = vmul.f32 %v230_v45, %v222_v37  ;;  %v734_v37 = vld [vmem:[%s803_s8] sm:$0x7] }
 0x35f   :  { %v326_v38 = vperm.slane %v734_v37, 0  ;;  %v374_v13 = vperm.slane %v734_v37, 2 }
 0x360   :  { %266 = vmatmul.f32.vlgmr.msra.gmra.mxu2 %v717_v46 }
 0x3e3   :  { %v267_v49 = vpop.f32.mrf.mxu2 }
 0x3e4   :  { %v268_v50 = vadd.f32 %v267_v49, %v249_v48  ;;  %v399_v48 = vld [vmem:[%s804_s9 + $0x70] sm:$0xff]  ;;  %v398_v49 = vld [vmem:[%s804_s9 + $0x68] sm:$0xff] }
 0x3e6   :  { %v270_v51 = vsel %vm117_vm1, %v268_v50, 0.0 }
 0x3e7   :  { %271 = vadd.xlane.f32.xlu2 %v270_v51  ;;  %v397_v51 = vld [vmem:[%s804_s9 + $0x60] sm:$0xff] }
 0x45a   :  { %v272_v52 = vpop.xlane.xlu2 %271 }
 0x45b   :  { %v273_v53 = vmul.f32 0.020833334, %v272_v52  ;;  %v396_v52 = vld [vmem:[%s804_s9 + $0x58] sm:$0xff] }
 0x45d   :  { %v274_v54 = vsub.f32 %v268_v50, %v273_v53  ;;  %v279_v59 = vmul.f32 %v273_v53, %v273_v53  ;;  %v395_v53 = vld [vmem:[%s804_s9 + $0x50] sm:$0xff] }
 0x45f   :  { %v275_v55 = vmul.f32 %v274_v54, %v274_v54  ;;  %v280_v63 = vmul.f32 80.0, %v279_v59 }
 0x461   :  { %v276_v56 = vsel %vm117_vm1, %v275_v55, 0.0 }
 0x462   :  { %277 = vadd.xlane.f32.xlu2 %v276_v56  ;;  %v394_v56 = vld [vmem:[%s804_s9 + $0x48] sm:$0xff] }
 0x4d5   :  { %v278_v0 = vpop.xlane.xlu2 %277 }
 0x4d6   :  { %v281_v2 = vsub.f32 %v278_v0, %v280_v63  ;;  %v390_v63 = vld [vmem:[%s804_s9 + $0x28] sm:$0xff]  ;;  %v389_v0 = vld [vmem:[%s804_s9 + $0x20] sm:$0xff] }
 0x4d8   :  { %v282_v4 = vmul.f32 0.020833334, %v281_v2 }
 0x4da   :  { %v283_v6 = vadd.f32 1e-05, %v282_v4  ;;  %v387_v4 = vld [vmem:[%s804_s9 + $0x10] sm:$0xff] }
 0x4dc   :  { %461 = vrsqrt.f32 %v283_v6  ;;  %vm290_vm9 = vweird.f32 %v283_v6 }
 0x4e2   :  { %v462_v11 = vpop.eup %461 }
 0x4e3   :  { %v285_v12 = vmul.f32 %v462_v11, %v283_v6  ;;  %vm291_vm8 = vweird.f32 %v462_v11  ;;  %v386_v6 = vld [vmem:[%s804_s9 + $0x8] sm:$0xff] }
 0x4e4   :  { %vm292_vm10 = vmor %vm290_vm9, %vm291_vm8 }
 0x4e5   :  { %v286_v14 = vmul.f32 %v462_v11, %v285_v12 }
 0x4e7   :  { %v287_v16 = vmul.f32 0.5, %v286_v14 }
 0x4e9   :  { %v288_v18 = vsub.f32 1.5, %v287_v16 }
 0x4eb   :  { %v289_v20 = vmul.f32 %v462_v11, %v288_v18 }
 0x4ed   :  { %v293_v22 = vsel %vm292_vm10, %v462_v11, %v289_v20  ;;  %v372_v11 = vperm.slane %v734_v37, 1 }
 0x4ee   :  { %v294_v24 = vmul.f32 %v293_v22, %v274_v54 }
 0x4f0   :  { %v296_v25 = vmul.f32 %v295_v21, %v294_v24 }
 0x4f2   :  { %v298_v26 = vadd.f32 %v297_v23, %v296_v25 }
 0x4f4   :  { %v299_v27 = vmul.f32 %v298_v26, %v298_v26 }
 0x4f6   :  { %v300_v28 = vmul.f32 %v299_v27, %v298_v26 }
 0x4f8   :  { %v301_v29 = vmul.f32 0.044715, %v300_v28 }
 0x4fa   :  { %v302_v30 = vadd.f32 %v301_v29, %v298_v26 }
 0x4fc   :  { %v303_v31 = vmul.f32 0.7978846, %v302_v30 }
 0x4fe   :  { %463 = vtanh.f32 %v303_v31 }
 0x504   :  { %v464_v32 = vpop.eup %463 }
 0x505   :  { %v305_v33 = vadd.f32 1.0, %v464_v32 }
 0x507   :  { %v306_v34 = vmul.f32 0.5, %v305_v33 }
 0x509   :  { %v307_v35 = vmul.f32 %v306_v34, %v298_v26  ;;  %v452_v26 = vld [vmem:[%s805_s10] ss:$0 sm:$0xff] }
 0x50b   :  { %v308_v36 = vadd.f32 %v307_v35, %v717_v46  ;;  %v400_v46 = vld [vmem:[%s804_s9 + $0x78] sm:$0xff] }
 0x50c   :  { %405 = vmatpush.msrb.mxu0 %v400_v46 }
 0x50d   :  { %343 = vmatmul.f32.vlgmr.msra.gmra.mxu3 %v308_v36 }
 0x50e   :  { %406 = vmatpush.msrb.mxu0 %v399_v48 }
 0x510   :  { %407 = vmatpush.msrb.mxu0 %v398_v49 }
 0x512   :  { %408 = vmatpush.msrb.mxu0 %v397_v51 }
 0x514   :  { %409 = vmatpush.msrb.mxu0 %v396_v52 }
 0x516   :  { %410 = vmatpush.msrb.mxu0 %v395_v53 }
 0x518   :  { %411 = vmatpush.msrb.mxu0 %v394_v56 }
 0x51a   :  { %412 = vmatpush.msrb.mxu0 %v393_v58 }
 0x51c   :  { %413 = vmatpush.msrb.mxu0 %v392_v60 }
 0x51e   :  { %414 = vmatpush.msrb.mxu0 %v391_v62 }
 0x520   :  { %415 = vmatpush.msrb.mxu0 %v390_v63 }
 0x522   :  { %416 = vmatpush.msrb.mxu0 %v389_v0 }
 0x524   :  { %417 = vmatpush.msrb.mxu0 %v388_v1 }
 0x526   :  { %418 = vmatpush.msrb.mxu0 %v387_v4 }
 0x528   :  { %419 = vmatpush.msrb.mxu0 %v386_v6 }
 0x52a   :  { %420 = vmatpush.msrb.mxu0 %v385_v8 }
 0x590   :  { %v344_v39 = vpop.f32.mrf.mxu3 }
 0x591   :  { %v345_v40 = vadd.f32 %v344_v39, %v326_v38 }
 0x593   :  { %v347_v41 = vsel %vm117_vm1, %v345_v40, 0.0 }
 0x594   :  { %348 = vadd.xlane.f32.xlu0 %v347_v41 }
 0x607   :  { %v349_v42 = vpop.xlane.xlu0 %348 }
 0x608   :  { %v350_v43 = vmul.f32 0.03125, %v349_v42 }
 0x60a   :  { %v351_v44 = vsub.f32 %v345_v40, %v350_v43  ;;  %v356_v50 = vmul.f32 %v350_v43, %v350_v43 }
 0x60c   :  { %v352_v45 = vmul.f32 %v351_v44, %v351_v44  ;;  %v357_v54 = vmul.f32 96.0, %v356_v50 }
 0x60e   :  { %v353_v47 = vsel %vm117_vm1, %v352_v45, 0.0 }
 0x60f   :  { %354 = vadd.xlane.f32.xlu1 %v353_v47 }
 0x682   :  { %v355_v55 = vpop.xlane.xlu1 %354 }
 0x683   :  { %v358_v57 = vsub.f32 %v355_v55, %v357_v54 }
 0x685   :  { %v359_v59 = vmul.f32 0.03125, %v358_v57 }
 0x687   :  { %v360_v61 = vadd.f32 1e-05, %v359_v59 }
 0x689   :  { %465 = vrsqrt.f32 %v360_v61  ;;  %vm367_vm12 = vweird.f32 %v360_v61 }
 0x68f   :  { %v466_v2 = vpop.eup %465 }
 0x690   :  { %v362_v3 = vmul.f32 %v466_v2, %v360_v61  ;;  %vm368_vm11 = vweird.f32 %v466_v2 }
 0x691   :  { %vm369_vm13 = vmor %vm367_vm12, %vm368_vm11 }
 0x692   :  { %v363_v5 = vmul.f32 %v466_v2, %v362_v3 }
 0x694   :  { %v364_v7 = vmul.f32 0.5, %v363_v5 }
 0x696   :  { %v365_v9 = vsub.f32 1.5, %v364_v7 }
 0x698   :  { %v366_v10 = vmul.f32 %v466_v2, %v365_v9 }
 0x69a   :  { %v370_v12 = vsel %vm369_vm13, %v466_v2, %v366_v10 }
 0x69b   :  { %v371_v14 = vmul.f32 %v370_v12, %v351_v44 }
 0x69d   :  { %v373_v15 = vmul.f32 %v372_v11, %v371_v14 }
 0x69f   :  { %v375_v16 = vadd.f32 %v374_v13, %v373_v15 }
 0x6a1   :  { %v376_v17 = vmul.f32 %v375_v16, %v375_v16 }
 0x6a3   :  { %v377_v18 = vmul.f32 %v376_v17, %v375_v16 }
 0x6a5   :  { %v378_v19 = vmul.f32 0.044715, %v377_v18 }
 0x6a7   :  { %v379_v20 = vadd.f32 %v378_v19, %v375_v16 }
 0x6a9   :  { %v380_v21 = vmul.f32 0.7978846, %v379_v20 }
 0x6ab   :  { %467 = vtanh.f32 %v380_v21 }
 0x6b1   :  { %v468_v22 = vpop.eup %467 }
 0x6b2   :  { %v382_v23 = vadd.f32 1.0, %v468_v22 }
 0x6b4   :  { %v383_v24 = vmul.f32 0.5, %v382_v23 }
 0x6b6   :  { %v384_v25 = vmul.f32 %v383_v24, %v375_v16 }
 0x6b8   :  { %421 = vmatmul.f32.vlgmr.msrb.gmra.mxu0 %v384_v25 }
 0x735   :  { %v422_v27 = vpop.f32.mrf.mxu0 }
 0x736   :  { %v423_v28 = vadd.f32 %v452_v26, %v422_v27 }
 0x738   :  { %426 = vst.msk [vmem:[#allocation8] sm:$0xf] %vm425_vm14, %v423_v28 }
 0x739   :  { %437 = dma.vmem_to_hbm [thread:$0]  %s433_s30, 64, %s435_s13, [#allocation4]  }
 0x73a   :  { %569 = dma.done.wait [#allocation4], 64  }
 0x73b   :  { %570 = vsyncadd [#allocation4], 4294967232 }
 0x73c   :  { %442 = vsyncpa [#allocation3], 1 }
 0x73d   :  { %443 = vsyncpa [#allocation6], 1 }
 0x73e   :  { %444 = vsyncpa [#allocation4], 1 }

</bundles_post_ra>
